<compile_context>
chip_gen: v5e
topology: v5e:2x2
jax: 0.10.0
libtpu: 0.0.40
codegen_flags: <defaults>
</compile_context>

<pallas_src>
import jax
import jax.numpy as jnp
from jax.experimental import pallas as pl
from jax.experimental.pallas import tpu as pltpu

EPS = 1e-5
_LANE = 128
_SUBLANE = 8


def _round_up(n, m):
    return ((n + m - 1) // m) * m


def _pad2d(a, rows, cols):
    pr, pc = rows - a.shape[0], cols - a.shape[1]
    if pr == 0 and pc == 0:
        return a
    return jnp.pad(a, ((0, pr), (0, pc)))


def _pick_batch_tile(n, target=256):
    target = max(_SUBLANE, (target // _SUBLANE) * _SUBLANE)
    if n <= target:
        return n
    for t in range(target, 0, -_SUBLANE):
        if n % t == 0:
            return t
    # TODO(synk): ragged batch tiles (masked partial statistics) not implemented;
    # fall back to whole-batch resident.
    return n


# --------------------------- kernels ----------------------------------------


def _mm1_stats_kernel(x_ref, w1_ref, h_ref, s_ref, ss_ref):
    # h = x @ W1 (bf16 operands, f32 accumulation on the MXU).
    h = jnp.dot(x_ref[...], w1_ref[...], preferred_element_type=jnp.float32)
    h_ref[...] = h.astype(h_ref.dtype)
    # Streaming BN statistics: per-tile sum and sum-of-squares over the batch.
    s_ref[...] = jnp.sum(h, axis=0, keepdims=True)
    ss_ref[...] = jnp.sum(h * h, axis=0, keepdims=True)


def _bn_relu_mm2_kernel(h_ref, scale_ref, bias_ref, w2_ref, z_ref, s_ref, ss_ref):
    # BN1 folded into one FMA per element, then ReLU, then second matmul.
    h = h_ref[...].astype(jnp.float32) * scale_ref[...] + bias_ref[...]
    h = jnp.maximum(h, 0.0).astype(jnp.bfloat16)
    z = jnp.dot(h, w2_ref[...], preferred_element_type=jnp.float32)
    z_ref[...] = z
    s_ref[...] = jnp.sum(z, axis=0, keepdims=True)
    ss_ref[...] = jnp.sum(z * z, axis=0, keepdims=True)


def _bn2_kernel(z_ref, scale_ref, bias_ref, o_ref):
    # Final affine-free BatchNorm as a single FMA per element.
    o_ref[...] = (z_ref[...] * scale_ref[...] + bias_ref[...]).astype(o_ref.dtype)


# --------------------------- wrapper -----------------------------------------


def projection_mlp(x, w1_t, w2_t, gamma, beta, *, batch_tile=256):
    """ProjectionMLP forward.

    x:     [N, D]   activations
    w1_t:  [D, 2D]  first Linear weight, transposed to (in, out)
    w2_t:  [2D, D]  second Linear weight, transposed to (in, out)
    gamma: [1, 2D]  BatchNorm1d(2D) weight
    beta:  [1, 2D]  BatchNorm1d(2D) bias
    """
    n, d = x.shape
    h_dim = w1_t.shape[1]
    assert w1_t.shape == (d, h_dim) and w2_t.shape == (h_dim, d)

    f32, bf16 = jnp.float32, jnp.bfloat16
    dp = _round_up(d, _LANE)
    hp = _round_up(h_dim, _LANE)
    tn = _pick_batch_tile(n, batch_tile)
    nb = n // tn

    # Lane-dense, bf16 MXU operands. Padded rows/columns are zero, stay exactly
    # zero through every stage below, and get sliced off at the end.
    xp = _pad2d(x.astype(bf16), n, dp)
    w1p = _pad2d(w1_t.astype(bf16), dp, hp)
    w2p = _pad2d(w2_t.astype(bf16), hp, dp)
    gp = _pad2d(gamma.astype(f32).reshape(1, h_dim), 1, hp)
    bp = _pad2d(beta.astype(f32).reshape(1, h_dim), 1, hp)

    cparams = pltpu.CompilerParams(
        dimension_semantics=("parallel",),          # megacore on v7x, no-op on v5e/v6e
        vmem_limit_bytes=48 * 1024 * 1024,          # safe on v5e/v6e (128 MiB) and v7x (64 MiB)
    )

    # --- Pass A: h = x @ W1, plus per-tile batch sum / sum-of-squares. -------
    h, s1, ss1 = pl.pallas_call(
        _mm1_stats_kernel,
        grid=(nb,),
        in_specs=[
            pl.BlockSpec((tn, dp), lambda i: (i, 0)),
            pl.BlockSpec((dp, hp), lambda i: (0, 0)),   # weight DMA'd once, stays resident
        ],
        out_specs=[
            pl.BlockSpec((tn, hp), lambda i: (i, 0)),
            pl.BlockSpec((1, hp), lambda i: (i, 0)),
            pl.BlockSpec((1, hp), lambda i: (i, 0)),
        ],
        out_shape=[
            jax.ShapeDtypeStruct((n, hp), bf16),
            jax.ShapeDtypeStruct((nb, hp), f32),
            jax.ShapeDtypeStruct((nb, hp), f32),
        ],
        compiler_params=cparams,
    )(xp, w1p)

    # Tiny cross-tile reduction; fold BN1 (affine) into one per-column FMA.
    mean1 = jnp.sum(s1, axis=0, keepdims=True) / n
    var1 = jnp.maximum(jnp.sum(ss1, axis=0, keepdims=True) / n - mean1 * mean1, 0.0)
    scale1 = gp * jax.lax.rsqrt(var1 + EPS)
    bias1 = bp - mean1 * scale1

    # --- Pass B: BN1 + ReLU + z = h @ W2, plus per-tile stats for BN2. -------
    z, s2, ss2 = pl.pallas_call(
        _bn_relu_mm2_kernel,
        grid=(nb,),
        in_specs=[
            pl.BlockSpec((tn, hp), lambda i: (i, 0)),
            pl.BlockSpec((1, hp), lambda i: (0, 0)),
            pl.BlockSpec((1, hp), lambda i: (0, 0)),
            pl.BlockSpec((hp, dp), lambda i: (0, 0)),
        ],
        out_specs=[
            pl.BlockSpec((tn, dp), lambda i: (i, 0)),
            pl.BlockSpec((1, dp), lambda i: (i, 0)),
            pl.BlockSpec((1, dp), lambda i: (i, 0)),
        ],
        out_shape=[
            jax.ShapeDtypeStruct((n, dp), f32),
            jax.ShapeDtypeStruct((nb, dp), f32),
            jax.ShapeDtypeStruct((nb, dp), f32),
        ],
        compiler_params=cparams,
    )(h, scale1, bias1, w2p)

    mean2 = jnp.sum(s2, axis=0, keepdims=True) / n
    var2 = jnp.maximum(jnp.sum(ss2, axis=0, keepdims=True) / n - mean2 * mean2, 0.0)
    scale2 = jax.lax.rsqrt(var2 + EPS)
    bias2 = -mean2 * scale2

    # --- Pass C: final affine-free BatchNorm. ---------------------------------
    out = pl.pallas_call(
        _bn2_kernel,
        grid=(nb,),
        in_specs=[
            pl.BlockSpec((tn, dp), lambda i: (i, 0)),
            pl.BlockSpec((1, dp), lambda i: (0, 0)),
            pl.BlockSpec((1, dp), lambda i: (0, 0)),
        ],
        out_specs=pl.BlockSpec((tn, dp), lambda i: (i, 0)),
        out_shape=jax.ShapeDtypeStruct((n, dp), x.dtype),
        compiler_params=cparams,
    )(z, scale2, bias2)

    return out[:, :d]


# --------------------------- reference & test ---------------------------------


def reference(x, w1_t, w2_t, gamma, beta):
    """f32 reference mirroring the bf16-into-MXU / f32-accumulate precision."""
    bf16, f32 = jnp.bfloat16, jnp.float32
    h = jnp.dot(x.astype(bf16), w1_t.astype(bf16), preferred_element_type=f32)
    m1 = h.mean(0, keepdims=True)
    v1 = (h * h).mean(0, keepdims=True) - m1 * m1
    s1 = gamma * jax.lax.rsqrt(v1 + EPS)
    b1 = beta - m1 * s1
    hq = h.astype(bf16).astype(f32) * s1 + b1
    hq = jnp.maximum(hq, 0.0)
    z = jnp.dot(hq.astype(bf16), w2_t.astype(bf16), preferred_element_type=f32)
    m2 = z.mean(0, keepdims=True)
    v2 = (z * z).mean(0, keepdims=True) - m2 * m2
    return (z - m2) * jax.lax.rsqrt(v2 + EPS)


if __name__ == "__main__":
    hidden_size = 32            # config.hidden_size
    hidden_dim = 2 * hidden_size
    batch = 8

    key = jax.random.PRNGKey(0)
    kx, k1, k2 = jax.random.split(key, 3)

    x = jax.random.normal(kx, (batch, hidden_size), dtype=jnp.float32)

    # torch nn.Linear stores weight as (out, in); pass transposed (in, out).
    w1 = jax.random.normal(k1, (hidden_dim, hidden_size), dtype=jnp.float32) * 0.05
    w2 = jax.random.normal(k2, (hidden_size, hidden_dim), dtype=jnp.float32) * 0.05
    w1_t = w1.T
    w2_t = w2.T

    # BatchNorm1d(hidden_dim) affine params at their PyTorch init values.
    gamma = jnp.ones((1, hidden_dim), dtype=jnp.float32)
    beta = jnp.zeros((1, hidden_dim), dtype=jnp.float32)

    out = projection_mlp(x, w1_t, w2_t, gamma, beta)
    out = jax.block_until_ready(out)

    ref = reference(x, w1_t, w2_t, gamma, beta)
    assert out.shape == (batch, hidden_size)
    err = float(jnp.max(jnp.abs(out - ref)))
    assert jnp.allclose(out, ref, atol=1e-2, rtol=1e-2), f"mismatch vs reference: {err:.3e}"

    print("KERNEL_OK")
</pallas_src>

<mosaic_0001>
module attributes {stable_mosaic.version = 11 : i64} {
  func.func @_mm1_stats_kernel(%arg0: i32, %arg1: memref<8x128xbf16, #tpu.memory_space<vmem>>, %arg2: memref<128x128xbf16, #tpu.memory_space<vmem>>, %arg3: memref<8x128xbf16, #tpu.memory_space<vmem>>, %arg4: memref<1x128xf32, #tpu.memory_space<vmem>>, %arg5: memref<1x128xf32, #tpu.memory_space<vmem>>) attributes {dimension_semantics = [#tpu.dimension_semantics<parallel>], iteration_bounds = array<i64: 1>, scalar_prefetch = 0 : i64, scratch_operands = 0 : i64, tpu.core_type = #tpu.core_type<tc>, window_params = [{transform_indices = @transform_0, window_bounds = array<i64: 8, 128>}, {pipeline_mode = #tpu.pipeline_mode<synchronous>, transform_indices = @transform_1, window_bounds = array<i64: 128, 128>}, {transform_indices = @transform_2, window_bounds = array<i64: 8, 128>}, {transform_indices = @transform_3, window_bounds = array<i64: 1, 128>}, {transform_indices = @transform_4, window_bounds = array<i64: 1, 128>}]} {
    %c0 = arith.constant 0 : index
    %c0_0 = arith.constant 0 : index
    %0 = vector.load %arg1[%c0, %c0_0] : memref<8x128xbf16, #tpu.memory_space<vmem>>, vector<8x128xbf16>
    %c0_1 = arith.constant 0 : index
    %c0_2 = arith.constant 0 : index
    %1 = vector.load %arg2[%c0_1, %c0_2] : memref<128x128xbf16, #tpu.memory_space<vmem>>, vector<128x128xbf16>
    %cst = arith.constant dense<0.000000e+00> : vector<8x128xf32>
    %2 = tpu.matmul %0, %1, %cst {dimension_numbers = #tpu.dot_dimension_numbers<[1], [0], [0], [1], [0, 0, 1, 1], [], []>} : vector<8x128xbf16>, vector<128x128xbf16>, vector<8x128xf32> -> vector<8x128xf32>
    %3 = arith.truncf %2 : vector<8x128xf32> to vector<8x128xbf16>
    %c0_3 = arith.constant 0 : index
    %c0_4 = arith.constant 0 : index
    %4 = vector.load %arg3[%c0_3, %c0_4] : memref<8x128xbf16, #tpu.memory_space<vmem>>, vector<8x128xbf16>
    tpu.vector_store %arg3[%c0_3, %c0_4], %3 {strides = array<i32>} : memref<8x128xbf16, #tpu.memory_space<vmem>>, vector<8x128xbf16>,
    %cst_5 = arith.constant dense<0.000000e+00> : vector<128xf32>
    %5 = vector.multi_reduction <add>, %2, %cst_5 [0] : vector<8x128xf32> to vector<128xf32>
    %6 = vector.shape_cast %5 : vector<128xf32> to vector<1x128xf32>
    %c0_6 = arith.constant 0 : index
    %c0_7 = arith.constant 0 : index
    %7 = vector.load %arg4[%c0_6, %c0_7] : memref<1x128xf32, #tpu.memory_space<vmem>>, vector<1x128xf32>
    tpu.vector_store %arg4[%c0_6, %c0_7], %6 {strides = array<i32>} : memref<1x128xf32, #tpu.memory_space<vmem>>, vector<1x128xf32>,
    %8 = arith.mulf %2, %2 : vector<8x128xf32>
    %cst_8 = arith.constant dense<0.000000e+00> : vector<128xf32>
    %9 = vector.multi_reduction <add>, %8, %cst_8 [0] : vector<8x128xf32> to vector<128xf32>
    %10 = vector.shape_cast %9 : vector<128xf32> to vector<1x128xf32>
    %c0_9 = arith.constant 0 : index
    %c0_10 = arith.constant 0 : index
    %11 = vector.load %arg5[%c0_9, %c0_10] : memref<1x128xf32, #tpu.memory_space<vmem>>, vector<1x128xf32>
    tpu.vector_store %arg5[%c0_9, %c0_10], %10 {strides = array<i32>} : memref<1x128xf32, #tpu.memory_space<vmem>>, vector<1x128xf32>,
    return
  }
  func.func @transform_0(%arg0: i32) -> (i32, i32) {
    %c0_i32 = arith.constant 0 : i32
    %c0_i32_0 = arith.constant 0 : i32
    return %arg0, %c0_i32 : i32, i32
  }
  func.func @transform_1(%arg0: i32) -> (i32, i32) {
    %c0_i32 = arith.constant 0 : i32
    %c0_i32_0 = arith.constant 0 : i32
    %c0_i32_1 = arith.constant 0 : i32
    return %c0_i32, %c0_i32_0 : i32, i32
  }
  func.func @transform_2(%arg0: i32) -> (i32, i32) {
    %c0_i32 = arith.constant 0 : i32
    %c0_i32_0 = arith.constant 0 : i32
    return %arg0, %c0_i32 : i32, i32
  }
  func.func @transform_3(%arg0: i32) -> (i32, i32) {
    %c0_i32 = arith.constant 0 : i32
    %c0_i32_0 = arith.constant 0 : i32
    return %arg0, %c0_i32 : i32, i32
  }
  func.func @transform_4(%arg0: i32) -> (i32, i32) {
    %c0_i32 = arith.constant 0 : i32
    %c0_i32_0 = arith.constant 0 : i32
    return %arg0, %c0_i32 : i32, i32
  }
}

</mosaic_0001>

<bundles_post_ra>
// kernel: tpu_custom_call.1
= control target key start
LH: loop header
LB: loop body
LE: loop exit
PB: predicated region body
PF: predicated region fallthrough
CT: control target
= control target key end

     0   :  { %10 = vsyncpa [#allocation3], 0  ;;  %s412_s0 = inlined_call_operand.hbm [shape: bf16[8,128], index: 0, kind: input, shape index: {}]   ;;  %s413_s1 = inlined_call_operand.hbm [shape: bf16[128,128], index: 1, kind: input, shape index: {}]   ;;  %s414_s2 = inlined_call_operand.hbm [shape: bf16[8,128], index: 2, kind: output, shape index: {0}]   ;;  %s415_s3 = inlined_call_operand.hbm [shape: f32[1,128], index: 3, kind: output, shape index: {1}]   ;;  %s416_s4 = inlined_call_operand.hbm [shape: f32[1,128], index: 4, kind: output, shape index: {2}]  }
   0x1   :  { %11 = vsyncpa [#allocation6], 0 }
   0x2   :  { %12 = vsyncpa [#allocation4], 0 }
   0x3   :  { %13 = vsyncpa [#allocation9], 0  ;;  %s19_s17 = sshll.u32 %s412_s0, 4  ;;  %s365_s18 = smov [#allocation2]   ;;  %s20_s17 = int_to_ptr.hbm [resolvable:$true] %s19_s17 }
   0x4   :  { %s21_s19 = sshll.u32 %s365_s18, 4  ;;  %s29_s22 = sshll.u32 %s413_s1, 4  ;;  %s22_s19 = int_to_ptr.vmem [resolvable:$true] %s21_s19  ;;  %s30_s22 = int_to_ptr.hbm [resolvable:$true] %s29_s22 }
   0x5   :  { %24 = dma.hbm_to_vmem [thread:$0]  %s20_s17, 64, %s22_s19, [#allocation3]  }
   0x6   :  { %s366_s23 = smov [#allocation5]   ;;  %s367_s25 = smov 64  }
   0x7   :  { %s31_s24 = sshll.u32 %s366_s23, 4  ;;  %s368_s26 = smov 4   ;;  %s32_s24 = int_to_ptr.vmem [resolvable:$true] %s31_s24 }
   0x8   :  { %37 = dma.hbm_to_vmem [thread:$0]  %s30_s22, 1024, %s32_s24, [#allocation6], %s367_s25, %s367_s25, %s368_s26  }
   0x9   :  { %357 = dma.done.wait [#allocation3], 64  }
   0xa   :  { %358 = vsyncadd [#allocation3], 4294967232 }
   0xb   :  { %359 = dma.done.wait [#allocation6], 1024  }
   0xc   :  { %360 = vsyncadd [#allocation6], 4294966272  ;;  %v229_v0 = vld [vmem:[#allocation5 + $0x38] sm:$0xff]  ;;  %v228_v1 = vld [vmem:[#allocation5 + $0x30] sm:$0xff]  ;;  %s369_s0 = smov [#allocation7]   ;;  %s148_s29 = sshll.u32 %s414_s2, 4  ;;  %s149_s29 = int_to_ptr.hbm [resolvable:$true] %s148_s29 }
   0xd   :  { %111 = vmatpush.bf16.msra.mxu0 %v229_v0  ;;  %v227_v2 = vld [vmem:[#allocation5 + $0x28] sm:$0xff]  ;;  %v226_v3 = vld [vmem:[#allocation5 + $0x20] sm:$0xff]  ;;  %v225_v4 = vld [vmem:[#allocation5 + $0x18] sm:$0xff]  ;;  %s146_s1 = sshll.u32 %s369_s0, 4  ;;  %s370_s30 = smov [#allocation8]   ;;  %s147_s1 = int_to_ptr.vmem [resolvable:$true] %s146_s1 }
   0xe   :  { %v224_v5 = vld [vmem:[#allocation5 + $0x10] sm:$0xff]  ;;  %v223_v6 = vld [vmem:[#allocation5 + $0x8] sm:$0xff]  ;;  %v222_v7 = vld [vmem:[#allocation5] sm:$0xff]  ;;  %s157_s5 = sshll.u32 %s370_s30, 4  ;;  %s159_s2 = sshll.u32 %s415_s3, 4  ;;  %s158_s5 = int_to_ptr.vmem [resolvable:$true] %s157_s5  ;;  %s160_s2 = int_to_ptr.hbm [resolvable:$true] %s159_s2 }
   0xf   :  { %v46_v8 = vld [vmem:[#allocation2] sm:$0xf]  ;;  %s371_s8 = smov [#allocation10]   ;;  %s170_s12 = sshll.u32 %s416_s4, 4  ;;  %s171_s12 = int_to_ptr.hbm [resolvable:$true] %s170_s12 }
  0x10   :  { %s168_s9 = sshll.u32 %s371_s8, 4  ;;  %s169_s9 = int_to_ptr.vmem [resolvable:$true] %s168_s9 }
  0x11   :  { %112 = vmatpush.bf16.msra.mxu0 %v228_v1 }
  0x15   :  { %113 = vmatpush.bf16.msra.mxu0 %v227_v2 }
  0x19   :  { %114 = vmatpush.bf16.msra.mxu0 %v226_v3 }
  0x1d   :  { %115 = vmatpush.bf16.msra.mxu0 %v225_v4 }
  0x21   :  { %116 = vmatpush.bf16.msra.mxu0 %v224_v5 }
  0x25   :  { %117 = vmatpush.bf16.msra.mxu0 %v223_v6 }
  0x29   :  { %118 = vmatpush.bf16.msra.mxu0 %v222_v7 }
  0x2c   :  { %119 = vmatmul.bf16.vlgmr.msra.gmra.mxu0 %v46_v8 }
  0xa9   :  { %v120_v9 = vpop.f32.mrf.mxu0 }
  0xaa   :  { %v126_v10 = vrot.slane %v120_v9, 4  ;;  %v133_v11 = vmul.f32 %v120_v9, %v120_v9  ;;  %v124_v12 = vpack.c.bf16 %v120_v9, %v120_v9 }
  0xac   :  { %v127_v13 = vadd.f32 %v126_v10, %v120_v9  ;;  %v134_v14 = vrot.slane %v133_v11, 4  ;;  %125 = vst [vmem:[#allocation7] sm:$0xf] %v124_v12 }
  0xad   :  { %151 = dma.vmem_to_hbm [thread:$0]  %s147_s1, 64, %s149_s29, [#allocation4]  }
  0xae   :  { %v128_v15 = vrot.slane %v127_v13, 2  ;;  %v135_v16 = vadd.f32 %v134_v14, %v133_v11 }
  0xb0   :  { %v136_v17 = vrot.slane %v135_v16, 2  ;;  %v129_v18 = vadd.f32 %v128_v15, %v127_v13 }
  0xb1   :  { %v122_v19 = vpop.f32.mrf.mxu0 }
  0xb2   :  { %v130_v20 = vrot.slane %v129_v18, 1  ;;  %v137_v21 = vadd.f32 %v136_v17, %v135_v16 }
  0xb4   :  { %v131_v22 = vadd.f32 %v130_v20, %v129_v18  ;;  %v138_v23 = vrot.slane %v137_v21, 1 }
  0xb6   :  { %132 = vst [vmem:[#allocation8] sm:$0x1] %v131_v22  ;;  %v139_v24 = vadd.f32 %v138_v23, %v137_v21 }
  0xb7   :  { %162 = dma.vmem_to_hbm [thread:$0]  %s158_s5, 16, %s160_s2, [#allocation9]  }
  0xb8   :  { %140 = vst [vmem:[#allocation10] sm:$0x1] %v139_v24 }
  0xb9   :  { %173 = dma.vmem_to_hbm [thread:$0]  %s169_s9, 16, %s171_s12, [#allocation9]  }
  0xba   :  { %361 = dma.done.wait [#allocation4], 64  }
  0xbb   :  { %362 = vsyncadd [#allocation4], 4294967232 }
  0xbc   :  { %363 = dma.done.wait [#allocation9], 32  }
  0xbd   :  { %364 = vsyncadd [#allocation9], 4294967264 }
  0xbe   :  { %186 = vsyncpa [#allocation3], 1 }
  0xbf   :  { %187 = vsyncpa [#allocation6], 1 }
  0xc0   :  { %188 = vsyncpa [#allocation4], 1 }
  0xc1   :  { %189 = vsyncpa [#allocation9], 1 }

</bundles_post_ra>
